<compile_context>
chip_gen: v6e
topology: v6e:2x2x1
jax: 0.10.0
libtpu: 0.0.40
codegen_flags: <defaults>
</compile_context>

<pallas_src>
import functools

import jax
import jax.numpy as jnp
from jax.experimental import pallas as pl
from jax.experimental.pallas import tpu as pltpu

LANE = 128       # vreg lane width  (last dim)
SUBLANE = 8      # vreg sublane width (second-to-last dim)
TILE_M_MAX = 256  # batch tile per grid step (feeds the 256x256 MXUs on v6e/v7x)


def _round_up(x, m):
    return ((x + m - 1) // m) * m


# ----------------------------- Pallas kernel ---------------------------------
def _mlp_fused_kernel(*refs, num_layers, activation):
    """Fused forward pass for the whole MLP on one batch tile.

    refs = (x_ref, w0_ref, b0_ref, ..., w{L-1}_ref, b{L-1}_ref, o_ref)
      x_ref : [tile_m, K0_pad]  f32   (VMEM, tiled over batch)
      wi_ref: [Ki_pad, Ni_pad]  bf16  (VMEM, resident: constant index_map)
      bi_ref: [1, Ni_pad]       f32   (VMEM, resident)
      o_ref : [tile_m, Nl_pad]  f32   (VMEM, tiled over batch)
    Layer loop is statically unrolled; activations never leave VMEM/vregs.
    """
    x_ref = refs[0]
    o_ref = refs[-1]
    wb_refs = refs[1:-1]

    h = x_ref[...]  # f32 [tile_m, K0_pad]
    for li in range(num_layers):
        w = wb_refs[2 * li][...]        # bf16 [K_pad, N_pad]
        b = wb_refs[2 * li + 1][...]    # f32  [1, N_pad]
        # bf16 x bf16 on the MXU, f32 accumulation.
        h = jnp.dot(h.astype(jnp.bfloat16), w,
                    preferred_element_type=jnp.float32) + b
        if li < num_layers - 1:         # hidden layers only
            if activation == "relu":
                h = jnp.maximum(h, 0.0)
            elif activation == "tanh":
                h = jnp.tanh(h)
            elif activation == "sigmoid":
                h = jax.nn.sigmoid(h)
            else:
                raise ValueError("Invalid activation")
            # NOTE: padded columns hold activation(0); they are multiplied by
            # zero-padded K rows of the next weight, so they never leak.
    o_ref[...] = h
    # TODO(synk): for very large input_size, add a trailing K-reduction grid
    # axis for the first layer with a VMEM f32 accumulator (pl.when init/finalize)
    # instead of loading the whole [K0_pad, N0_pad] weight at once.


# ------------------------------ MLP wrapper ----------------------------------
def xavier_normal(key, out_features, in_features, dtype=jnp.float32):
    # gain=1; std = sqrt(2 / (fan_in + fan_out)), matching nn.init.xavier_normal_
    std = (2.0 / (in_features + out_features)) ** 0.5
    return std * jax.random.normal(key, (out_features, in_features), dtype=dtype)


def init_mlp_params(key, input_size, hidden_sizes, num_classes):
    assert len(hidden_sizes) > 1, "You should at least have one hidden layer"
    params = []
    prev = input_size
    sizes = list(hidden_sizes) + [num_classes]
    keys = jax.random.split(key, len(sizes))
    for k, hs in zip(keys, sizes):
        w = xavier_normal(k, hs, prev)          # PyTorch layout [out, in]
        b = jnp.zeros((hs,), jnp.float32)
        params.append((w, b))
        prev = hs
    return params


def prepare_mlp_params(params, input_size):
    """One-time layout plumbing: transpose W -> [K, N], zero-pad to lane-dense
    (multiple-of-128) widths, cast weights to bf16 for the MXU / halved DMA."""
    padded = []
    prev_pad = _round_up(input_size, LANE)
    for (w, b) in params:
        n, k = w.shape
        n_pad = _round_up(n, LANE)
        w_kn = jnp.pad(w.T, ((0, prev_pad - k), (0, n_pad - n)))        # [K_pad, N_pad]
        w_kn = w_kn.astype(jnp.bfloat16)
        b_pad = jnp.pad(b, (0, n_pad - n)).reshape(1, n_pad).astype(jnp.float32)
        padded.append((w_kn, b_pad))
        prev_pad = n_pad
    return padded
    # TODO(synk): optional per-generation weight quantization (fp8 on v7x,
    # int8 on v5e/v6e) for another 2x off weight DMA/VMEM.


@functools.partial(jax.jit, static_argnames=("num_classes", "activation"))
def mlp_forward(images, padded_params, num_classes, activation="relu"):
    """images: [batch, channels, height, width] -> logits [batch, num_classes]."""
    B = images.shape[0]
    x = images.reshape(B, -1).astype(jnp.float32)   # flatten (plain-JAX glue)
    K = x.shape[1]

    K0_pad = padded_params[0][0].shape[0]
    n_out_pad = padded_params[-1][0].shape[1]
    num_layers = len(padded_params)

    # Batch tiling: one tile if the (8-aligned) batch fits, else 256-row tiles.
    B8 = _round_up(B, SUBLANE)
    if B8 <= TILE_M_MAX:
        tile_m = B8
        B_pad = B8
    else:
        tile_m = TILE_M_MAX
        B_pad = _round_up(B, TILE_M_MAX)
    x = jnp.pad(x, ((0, B_pad - B), (0, K0_pad - K)))
    grid = (B_pad // tile_m,)

    flat_args = []
    in_specs = [pl.BlockSpec((tile_m, K0_pad), lambda i: (i, 0))]       # x: batch-tiled
    for w, b in padded_params:
        flat_args += [w, b]
        # Constant block index -> weights/biases stay resident across batch tiles.
        # TODO(synk): pipeline_mode=pl.Buffered(1) on these specs would halve
        # their VMEM (no double buffer) once supported everywhere.
        in_specs += [
            pl.BlockSpec(w.shape, lambda i: (0, 0)),
            pl.BlockSpec(b.shape, lambda i: (0, 0)),
        ]
    out_spec = pl.BlockSpec((tile_m, n_out_pad), lambda i: (i, 0))

    # --- cost estimate & explicit VMEM budget -------------------------------
    flops = 2 * B_pad * sum(w.shape[0] * w.shape[1] for w, _ in padded_params)
    transcendentals = (0 if activation == "relu"
                       else B_pad * sum(w.shape[1] for w, _ in padded_params[:-1]))
    weight_bytes = sum(w.size * w.dtype.itemsize + b.size * b.dtype.itemsize
                       for w, b in padded_params)
    bytes_accessed = int(x.size * 4 + weight_bytes + B_pad * n_out_pad * 4)

    widest = max(K0_pad, max(w.shape[1] for w, _ in padded_params))
    vmem_need = (2 * weight_bytes                                    # (possibly) double-buffered weights
                 + 2 * (tile_m * K0_pad * 4 + tile_m * n_out_pad * 4)  # double-buffered x / out tiles
                 + 4 * tile_m * widest * 4)                          # intermediate activations headroom
    vmem_limit = int(min(max(vmem_need * 3 // 2 + (4 << 20), 32 << 20), 64 << 20))

    kernel = functools.partial(
        _mlp_fused_kernel, num_layers=num_layers, activation=activation
    )
    out = pl.pallas_call(
        kernel,
        out_shape=jax.ShapeDtypeStruct((B_pad, n_out_pad), jnp.float32),
        grid=grid,
        in_specs=in_specs,
        out_specs=out_spec,
        compiler_params=pltpu.CompilerParams(
            dimension_semantics=("parallel",),       # batch axis -> megacore on v7x
            vmem_limit_bytes=vmem_limit,
        ),
        cost_estimate=pl.CostEstimate(
            flops=flops,
            transcendentals=transcendentals,
            bytes_accessed=bytes_accessed,
        ),
    )(x, *flat_args)

    # Slice padded logits back to the true shape (parity with PyTorch module).
    return out[:B, :num_classes]


# --------------------------------- main ---------------------------------------
if __name__ == "__main__":
    key = jax.random.PRNGKey(0)
    k_img, k_params = jax.random.split(key)

    batch, channels, height, width = 2, 4, 16, 16
    input_size = channels * height * width  # 1024
    hidden_sizes = [32, 32]
    num_classes = 10
    activation = "relu"

    images = jax.random.normal(
        k_img, (batch, channels, height, width), dtype=jnp.float32
    )
    params = init_mlp_params(k_params, input_size, hidden_sizes, num_classes)
    padded_params = prepare_mlp_params(params, input_size)

    logits = mlp_forward(images, padded_params, num_classes, activation=activation)
    jax.block_until_ready(logits)

    # Reference in plain JAX mirroring the kernel's bf16-input / f32-accumulate
    # matmuls (exact products, f32 accumulation -> tight tolerance).
    h = images.reshape(batch, -1).astype(jnp.float32)
    for idx, (w, b) in enumerate(params):
        h_bf = h.astype(jnp.bfloat16).astype(jnp.float32)
        w_bf = w.astype(jnp.bfloat16).astype(jnp.float32)
        h = jnp.dot(h_bf, w_bf.T, precision=jax.lax.Precision.HIGHEST) + b
        if idx < len(params) - 1:
            h = jnp.maximum(h, 0.0)
    ref = h

    assert logits.shape == (batch, num_classes)
    assert jnp.allclose(logits, ref, atol=1e-2, rtol=1e-2)

    print("KERNEL_OK")
</pallas_src>

<mosaic_0001>
module attributes {stable_mosaic.version = 11 : i64} {
  func.func @_mlp_fused_kernel(%arg0: i32, %arg1: memref<8x1024xf32, #tpu.memory_space<vmem>>, %arg2: memref<1024x128xbf16, #tpu.memory_space<vmem>>, %arg3: memref<1x128xf32, #tpu.memory_space<vmem>>, %arg4: memref<128x128xbf16, #tpu.memory_space<vmem>>, %arg5: memref<1x128xf32, #tpu.memory_space<vmem>>, %arg6: memref<128x128xbf16, #tpu.memory_space<vmem>>, %arg7: memref<1x128xf32, #tpu.memory_space<vmem>>, %arg8: memref<8x128xf32, #tpu.memory_space<vmem>>) attributes {dimension_semantics = [#tpu.dimension_semantics<parallel>], iteration_bounds = array<i64: 1>, scalar_prefetch = 0 : i64, scratch_operands = 0 : i64, tpu.core_type = #tpu.core_type<tc>, window_params = [{transform_indices = @transform_0, window_bounds = array<i64: 8, 1024>}, {pipeline_mode = #tpu.pipeline_mode<synchronous>, transform_indices = @transform_1, window_bounds = array<i64: 1024, 128>}, {pipeline_mode = #tpu.pipeline_mode<synchronous>, transform_indices = @transform_2, window_bounds = array<i64: 1, 128>}, {pipeline_mode = #tpu.pipeline_mode<synchronous>, transform_indices = @transform_3, window_bounds = array<i64: 128, 128>}, {pipeline_mode = #tpu.pipeline_mode<synchronous>, transform_indices = @transform_4, window_bounds = array<i64: 1, 128>}, {pipeline_mode = #tpu.pipeline_mode<synchronous>, transform_indices = @transform_5, window_bounds = array<i64: 128, 128>}, {pipeline_mode = #tpu.pipeline_mode<synchronous>, transform_indices = @transform_6, window_bounds = array<i64: 1, 128>}, {transform_indices = @transform_7, window_bounds = array<i64: 8, 128>}]} {
    %c0 = arith.constant 0 : index
    %c0_0 = arith.constant 0 : index
    %0 = vector.load %arg1[%c0, %c0_0] : memref<8x1024xf32, #tpu.memory_space<vmem>>, vector<8x1024xf32>
    %c0_1 = arith.constant 0 : index
    %c0_2 = arith.constant 0 : index
    %1 = vector.load %arg2[%c0_1, %c0_2] : memref<1024x128xbf16, #tpu.memory_space<vmem>>, vector<1024x128xbf16>
    %c0_3 = arith.constant 0 : index
    %c0_4 = arith.constant 0 : index
    %2 = vector.load %arg3[%c0_3, %c0_4] : memref<1x128xf32, #tpu.memory_space<vmem>>, vector<1x128xf32>
    %3 = arith.truncf %0 : vector<8x1024xf32> to vector<8x1024xbf16>
    %cst = arith.constant dense<0.000000e+00> : vector<8x128xf32>
    %4 = tpu.matmul %3, %1, %cst {dimension_numbers = #tpu.dot_dimension_numbers<[1], [0], [0], [1], [0, 0, 1, 1], [], []>} : vector<8x1024xbf16>, vector<1024x128xbf16>, vector<8x128xf32> -> vector<8x128xf32>
    %5 = vector.broadcast %2 : vector<1x128xf32> to vector<8x128xf32>
    %6 = arith.addf %4, %5 : vector<8x128xf32>
    %cst_5 = arith.constant 0.000000e+00 : f32
    %7 = vector.broadcast %cst_5 : f32 to vector<8x128xf32>
    %8 = arith.maximumf %6, %7 : vector<8x128xf32>
    %c0_6 = arith.constant 0 : index
    %c0_7 = arith.constant 0 : index
    %9 = vector.load %arg4[%c0_6, %c0_7] : memref<128x128xbf16, #tpu.memory_space<vmem>>, vector<128x128xbf16>
    %c0_8 = arith.constant 0 : index
    %c0_9 = arith.constant 0 : index
    %10 = vector.load %arg5[%c0_8, %c0_9] : memref<1x128xf32, #tpu.memory_space<vmem>>, vector<1x128xf32>
    %11 = arith.truncf %8 : vector<8x128xf32> to vector<8x128xbf16>
    %cst_10 = arith.constant dense<0.000000e+00> : vector<8x128xf32>
    %12 = tpu.matmul %11, %9, %cst_10 {dimension_numbers = #tpu.dot_dimension_numbers<[1], [0], [0], [1], [0, 0, 1, 1], [], []>} : vector<8x128xbf16>, vector<128x128xbf16>, vector<8x128xf32> -> vector<8x128xf32>
    %13 = vector.broadcast %10 : vector<1x128xf32> to vector<8x128xf32>
    %14 = arith.addf %12, %13 : vector<8x128xf32>
    %cst_11 = arith.constant 0.000000e+00 : f32
    %15 = vector.broadcast %cst_11 : f32 to vector<8x128xf32>
    %16 = arith.maximumf %14, %15 : vector<8x128xf32>
    %c0_12 = arith.constant 0 : index
    %c0_13 = arith.constant 0 : index
    %17 = vector.load %arg6[%c0_12, %c0_13] : memref<128x128xbf16, #tpu.memory_space<vmem>>, vector<128x128xbf16>
    %c0_14 = arith.constant 0 : index
    %c0_15 = arith.constant 0 : index
    %18 = vector.load %arg7[%c0_14, %c0_15] : memref<1x128xf32, #tpu.memory_space<vmem>>, vector<1x128xf32>
    %19 = arith.truncf %16 : vector<8x128xf32> to vector<8x128xbf16>
    %cst_16 = arith.constant dense<0.000000e+00> : vector<8x128xf32>
    %20 = tpu.matmul %19, %17, %cst_16 {dimension_numbers = #tpu.dot_dimension_numbers<[1], [0], [0], [1], [0, 0, 1, 1], [], []>} : vector<8x128xbf16>, vector<128x128xbf16>, vector<8x128xf32> -> vector<8x128xf32>
    %21 = vector.broadcast %18 : vector<1x128xf32> to vector<8x128xf32>
    %22 = arith.addf %20, %21 : vector<8x128xf32>
    %c0_17 = arith.constant 0 : index
    %c0_18 = arith.constant 0 : index
    %23 = vector.load %arg8[%c0_17, %c0_18] : memref<8x128xf32, #tpu.memory_space<vmem>>, vector<8x128xf32>
    tpu.vector_store %arg8[%c0_17, %c0_18], %22 {strides = array<i32>} : memref<8x128xf32, #tpu.memory_space<vmem>>, vector<8x128xf32>,
    return
  }
  func.func @transform_0(%arg0: i32) -> (i32, i32) {
    %c0_i32 = arith.constant 0 : i32
    %c0_i32_0 = arith.constant 0 : i32
    return %arg0, %c0_i32 : i32, i32
  }
  func.func @transform_1(%arg0: i32) -> (i32, i32) {
    %c0_i32 = arith.constant 0 : i32
    %c0_i32_0 = arith.constant 0 : i32
    %c0_i32_1 = arith.constant 0 : i32
    return %c0_i32, %c0_i32_0 : i32, i32
  }
  func.func @transform_2(%arg0: i32) -> (i32, i32) {
    %c0_i32 = arith.constant 0 : i32
    %c0_i32_0 = arith.constant 0 : i32
    %c0_i32_1 = arith.constant 0 : i32
    return %c0_i32, %c0_i32_0 : i32, i32
  }
  func.func @transform_3(%arg0: i32) -> (i32, i32) {
    %c0_i32 = arith.constant 0 : i32
    %c0_i32_0 = arith.constant 0 : i32
    %c0_i32_1 = arith.constant 0 : i32
    return %c0_i32, %c0_i32_0 : i32, i32
  }
  func.func @transform_4(%arg0: i32) -> (i32, i32) {
    %c0_i32 = arith.constant 0 : i32
    %c0_i32_0 = arith.constant 0 : i32
    %c0_i32_1 = arith.constant 0 : i32
    return %c0_i32, %c0_i32_0 : i32, i32
  }
  func.func @transform_5(%arg0: i32) -> (i32, i32) {
    %c0_i32 = arith.constant 0 : i32
    %c0_i32_0 = arith.constant 0 : i32
    %c0_i32_1 = arith.constant 0 : i32
    return %c0_i32, %c0_i32_0 : i32, i32
  }
  func.func @transform_6(%arg0: i32) -> (i32, i32) {
    %c0_i32 = arith.constant 0 : i32
    %c0_i32_0 = arith.constant 0 : i32
    %c0_i32_1 = arith.constant 0 : i32
    return %c0_i32, %c0_i32_0 : i32, i32
  }
  func.func @transform_7(%arg0: i32) -> (i32, i32) {
    %c0_i32 = arith.constant 0 : i32
    %c0_i32_0 = arith.constant 0 : i32
    return %arg0, %c0_i32 : i32, i32
  }
}

</mosaic_0001>

<bundles_post_ra>
// kernel: mlp_forward.1
= control target key start
LH: loop header
LB: loop body
LE: loop exit
PB: predicated region body
PF: predicated region fallthrough
CT: control target
= control target key end

     0   :  { %12 = vsyncpa [#allocation3], 0  ;;  %s1304_s24 = smov [#allocation2]   ;;  %s1454_s0 = inlined_call_operand.vmem [shape: f32[8,1024], index: 0, kind: input, shape index: {}]   ;;  %s1455_s1 = inlined_call_operand.hbm [shape: bf16[1024,128], index: 1, kind: input, shape index: {}]   ;;  %s1456_s2 = inlined_call_operand.vmem [shape: f32[1,128], index: 2, kind: input, shape index: {}]   ;;  %s1457_s3 = inlined_call_operand.vmem [shape: bf16[128,128], index: 3, kind: input, shape index: {}]   ;;  %s1458_s4 = inlined_call_operand.vmem [shape: f32[1,128], index: 4, kind: input, shape index: {}]   ;;  %s1459_s5 = inlined_call_operand.vmem [shape: bf16[128,128], index: 5, kind: input, shape index: {}]   ;;  %s1460_s6 = inlined_call_operand.vmem [shape: f32[1,128], index: 6, kind: input, shape index: {}]   ;;  %s1461_s7 = inlined_call_operand.vmem [shape: f32[8,128], index: 7, kind: output, shape index: {}]  }
   0x1   :  { %s20_s25 = sshll.u32 %s1304_s24, 4  ;;  %s21_s25 = int_to_ptr.vmem [resolvable:$true] %s20_s25 }
   0x2   :  { %s1290_s26 = scalar_lea.vmem %s21_s25, 8192  ;;  %p1295_p1 = scmp.lt.s32.totalorder %s21_s25, %s21_s25 }
   0x3   :  { %p1291_p0 = scmp.ne.s32.totalorder %s21_s25, %s1290_s26  ;;  %p1296_p2 = scmp.lt.s32.totalorder %s1290_s26, %s1290_s26 }
   0x5   :  { %p1297_p3 = por %p1296_p2, %p1295_p1 }
   0x7   :  { %p1298_p4 = pnand %p1297_p3, %p1291_p0 }
   0x9   :  { %1301 = shalt.err (!%p1298_p4)
}
   0xa   :  { %s1305_s27 = smov 64   ;;  %s1306_s28 = smov 4  }
   0xb   :  { %26 = dma.hbm_to_vmem [thread:$0]  %s1455_s1, 8192, %s21_s25, [#allocation3], %s1305_s27, %s1305_s27, %s1306_s28  }
   0xc   :  { %1302 = dma.done.wait [#allocation3], 8192  }
   0xd   :  { %1303 = vsyncadd [#allocation3], 4294959104  ;;  %v1202_v0 = vld [vmem:[#allocation2 + $0x78] sm:$0xff]   ;;  %v1206_v4 = vld [vmem:[#allocation2 + $0x70] sm:$0xff]   ;;  %vm1308_vm0 = vmmov 0  }
   0xe   :  { %v1203_v1 = vld [vmem:[#allocation2 + $0xf8] sm:$0xff]   ;;  %1051 = vmatprep.subr.bf16.mxu0 %v1202_v0  ;;  %v1207_v5 = vld [vmem:[#allocation2 + $0xf0] sm:$0xff]   ;;  %v1210_v8 = vld [vmem:[#allocation2 + $0x68] sm:$0xff]  }
   0xf   :  { %v1204_v2 = vld [vmem:[#allocation2 + $0x38] sm:$0xff]   ;;  %1073 = vmatprep.subr.bf16.mxu1 %v1203_v1  ;;  %v1208_v6 = vld [vmem:[#allocation2 + $0x30] sm:$0xff]   ;;  %v1211_v9 = vld [vmem:[#allocation2 + $0xe8] sm:$0xff]  }
  0x10   :  { %v1205_v3 = vld [vmem:[#allocation2 + $0xb8] sm:$0xff]   ;;  %1052 = vmatpush3.bf16.msra.mxu0 %v1204_v2  ;;  %v1209_v7 = vld [vmem:[#allocation2 + $0xb0] sm:$0xff]   ;;  %v1212_v10 = vld [vmem:[#allocation2 + $0x28] sm:$0xff]  }
  0x11   :  { %1074 = vmatpush3.bf16.msra.mxu1 %v1205_v3  ;;  %1053 = vmatprep.subr.bf16.mxu0 %v1206_v4  ;;  %v1213_v11 = vld [vmem:[#allocation2 + $0xa8] sm:$0xff]   ;;  %v1214_v12 = vld [vmem:[#allocation2 + $0x60] sm:$0xff]   ;;  %v1218_v16 = vld [vmem:[#allocation2 + $0x58] sm:$0xff]  }
  0x12   :  { %1075 = vmatprep.subr.bf16.mxu1 %v1207_v5  ;;  %v1215_v13 = vld [vmem:[#allocation2 + $0xe0] sm:$0xff]   ;;  %v1219_v17 = vld [vmem:[#allocation2 + $0xd8] sm:$0xff]   ;;  %v1222_v20 = vld [vmem:[#allocation2 + $0x50] sm:$0xff]  }
  0x13   :  { %v1216_v14 = vld [vmem:[#allocation2 + $0x20] sm:$0xff]   ;;  %v1220_v18 = vld [vmem:[#allocation2 + $0x18] sm:$0xff]   ;;  %v1223_v21 = vld [vmem:[#allocation2 + $0xd0] sm:$0xff]  }
  0x14   :  { %1054 = vmatpush3.bf16.msra.mxu0 %v1208_v6  ;;  %v1217_v15 = vld [vmem:[#allocation2 + $0xa0] sm:$0xff]   ;;  %v1221_v19 = vld [vmem:[#allocation2 + $0x98] sm:$0xff]   ;;  %v1224_v22 = vld [vmem:[#allocation2 + $0x10] sm:$0xff]  }
  0x15   :  { %1076 = vmatpush3.bf16.msra.mxu1 %v1209_v7  ;;  %1055 = vmatprep.subr.bf16.mxu0 %v1210_v8  ;;  %v1225_v23 = vld [vmem:[#allocation2 + $0x90] sm:$0xff]   ;;  %v1226_v24 = vld [vmem:[#allocation2 + $0x48] sm:$0xff]   ;;  %v1230_v28 = vld [vmem:[#allocation2 + $0x40] sm:$0xff]  }
  0x16   :  { %1077 = vmatprep.subr.bf16.mxu1 %v1211_v9  ;;  %v1227_v25 = vld [vmem:[#allocation2 + $0xc8] sm:$0xff]   ;;  %v1231_v29 = vld [vmem:[#allocation2 + $0xc0] sm:$0xff]   ;;  %v44_v33 = vld [vmem:[%s1454_s0 + $0x18] sm:$0xff] }
  0x17   :  { %v1228_v26 = vld [vmem:[#allocation2 + $0x8] sm:$0xff]   ;;  %v1232_v30 = vld [vmem:[#allocation2] sm:$0xff]   ;;  %v181_v36 = vpack.c.bf16 %v44_v33, %v44_v33  ;;  %v43_v38 = vld [vmem:[%s1454_s0 + $0x10] sm:$0xff] }
  0x18   :  { %1056 = vmatpush3.bf16.msra.mxu0 %v1212_v10  ;;  %v1229_v27 = vld [vmem:[#allocation2 + $0x88] sm:$0xff]   ;;  %v1233_v31 = vld [vmem:[#allocation2 + $0x80] sm:$0xff]   ;;  %v180_v39 = vpack.c.bf16 %v43_v38, %v43_v38  ;;  %v1234_v40 = vld [vmem:[#allocation2 + $0x178] sm:$0xff]  }
  0x19   :  { %1078 = vmatpush3.bf16.msra.mxu1 %v1213_v11  ;;  %1057 = vmatprep.subr.bf16.mxu0 %v1214_v12  ;;  %v42_v32 = vld [vmem:[%s1454_s0 + $0x8] sm:$0xff]  ;;  %v41_v34 = vld [vmem:[%s1454_s0] sm:$0xff]  ;;  %v1235_v41 = vld [vmem:[#allocation2 + $0x1f8] sm:$0xff]  }
  0x1a   :  { %1079 = vmatprep.subr.bf16.mxu1 %v1215_v13  ;;  %v179_v35 = vpack.c.bf16 %v42_v32, %v42_v32  ;;  %v178_v37 = vpack.c.bf16 %v41_v34, %v41_v34  ;;  %648 = vmatprep.mubr.bf16.mxu1 %v181_v36  ;;  %v1236_v42 = vld [vmem:[#allocation2 + $0x138] sm:$0xff]   ;;  %v1238_v44 = vld [vmem:[#allocation2 + $0x170] sm:$0xff]   ;;  %v1242_v48 = vld [vmem:[#allocation2 + $0x168] sm:$0xff]  }
  0x1b   :  { %v1237_v43 = vld [vmem:[#allocation2 + $0x1b8] sm:$0xff]   ;;  %v1239_v45 = vld [vmem:[#allocation2 + $0x1f0] sm:$0xff]   ;;  %v1243_v49 = vld [vmem:[#allocation2 + $0x1e8] sm:$0xff]  }
  0x1c   :  { %1058 = vmatpush3.bf16.msra.mxu0 %v1216_v14  ;;  %608 = vmatprep.mubr.bf16.mxu0 %v179_v35  ;;  %v1240_v46 = vld [vmem:[#allocation2 + $0x130] sm:$0xff]   ;;  %v1244_v50 = vld [vmem:[#allocation2 + $0x128] sm:$0xff]   ;;  %v1246_v52 = vld [vmem:[#allocation2 + $0x160] sm:$0xff]  }
  0x1d   :  { %1080 = vmatpush3.bf16.msra.mxu1 %v1217_v15  ;;  %1059 = vmatprep.subr.bf16.mxu0 %v1218_v16  ;;  %v1241_v47 = vld [vmem:[#allocation2 + $0x1b0] sm:$0xff]   ;;  %v1245_v51 = vld [vmem:[#allocation2 + $0x1a8] sm:$0xff]   ;;  %v1247_v53 = vld [vmem:[#allocation2 + $0x1e0] sm:$0xff]  }
  0x1e   :  { %1081 = vmatprep.subr.bf16.mxu1 %v1219_v17  ;;  %v1248_v54 = vld [vmem:[#allocation2 + $0x120] sm:$0xff]   ;;  %v1250_v56 = vld [vmem:[#allocation2 + $0x158] sm:$0xff]   ;;  %v1254_v60 = vld [vmem:[#allocation2 + $0x150] sm:$0xff]   ;;  %v1307_v17 = vmov 0.0  }
  0x1f   :  { %v1249_v55 = vld [vmem:[#allocation2 + $0x1a0] sm:$0xff]   ;;  %v1251_v57 = vld [vmem:[#allocation2 + $0x1d8] sm:$0xff]   ;;  %v1255_v61 = vld [vmem:[#allocation2 + $0x1d0] sm:$0xff]  }
  0x20   :  { %1060 = vmatpush3.bf16.msra.mxu0 %v1220_v18  ;;  %v1252_v58 = vld [vmem:[#allocation2 + $0x118] sm:$0xff]   ;;  %v1256_v62 = vld [vmem:[#allocation2 + $0x110] sm:$0xff]   ;;  %v1258_v0 = vld [vmem:[#allocation2 + $0x148] sm:$0xff]  }
  0x21   :  { %1082 = vmatpush3.bf16.msra.mxu1 %v1221_v19  ;;  %1061 = vmatprep.subr.bf16.mxu0 %v1222_v20  ;;  %v1253_v59 = vld [vmem:[#allocation2 + $0x198] sm:$0xff]   ;;  %v1257_v63 = vld [vmem:[#allocation2 + $0x190] sm:$0xff]   ;;  %v1259_v1 = vld [vmem:[#allocation2 + $0x1c8] sm:$0xff]  }
  0x22   :  { %1083 = vmatprep.subr.bf16.mxu1 %v1223_v21  ;;  %v1260_v2 = vld [vmem:[#allocation2 + $0x108] sm:$0xff]   ;;  %v1262_v4 = vld [vmem:[#allocation2 + $0x140] sm:$0xff]   ;;  %v48_v9 = vld [vmem:[%s1454_s0 + $0x38] sm:$0xff] }
  0x23   :  { %v1261_v3 = vld [vmem:[#allocation2 + $0x188] sm:$0xff]   ;;  %v1263_v5 = vld [vmem:[#allocation2 + $0x1c0] sm:$0xff]   ;;  %v185_v11 = vpack.c.bf16 %v48_v9, %v48_v9  ;;  %v47_v13 = vld [vmem:[%s1454_s0 + $0x30] sm:$0xff] }
  0x24   :  { %1062 = vmatpush3.bf16.msra.mxu0 %v1224_v22  ;;  %v1264_v6 = vld [vmem:[#allocation2 + $0x100] sm:$0xff]   ;;  %v46_v8 = vld [vmem:[%s1454_s0 + $0x28] sm:$0xff]  ;;  %v184_v15 = vpack.c.bf16 %v47_v13, %v47_v13  ;;  %v1266_v16 = vld [vmem:[%s1457_s3 + $0x38] sm:$0xff]  }
  0x25   :  { %1084 = vmatpush3.bf16.msra.mxu1 %v1225_v23  ;;  %1063 = vmatprep.subr.bf16.mxu0 %v1226_v24  ;;  %v1265_v7 = vld [vmem:[#allocation2 + $0x180] sm:$0xff]   ;;  %v183_v10 = vpack.c.bf16 %v46_v8, %v46_v8  ;;  %v1267_v18 = vld [vmem:[%s1457_s3 + $0x30] sm:$0xff]   ;;  %v1268_v19 = vld [vmem:[%s1457_s3 + $0x28] sm:$0xff]  }
  0x26   :  { %1085 = vmatprep.subr.bf16.mxu1 %v1227_v25  ;;  %v45_v12 = vld [vmem:[%s1454_s0 + $0x20] sm:$0xff]  ;;  %v1270_v21 = vld [vmem:[%s1457_s3 + $0x18] sm:$0xff]   ;;  %v1271_v22 = vld [vmem:[%s1457_s3 + $0x10] sm:$0xff]  }
  0x27   :  { %v182_v14 = vpack.c.bf16 %v45_v12, %v45_v12  ;;  %v1269_v20 = vld [vmem:[%s1457_s3 + $0x20] sm:$0xff]   ;;  %v1272_v23 = vld [vmem:[%s1457_s3 + $0x8] sm:$0xff]   ;;  %v1274_v25 = vld [vmem:[%s1459_s5 + $0x38] sm:$0xff]  }
  0x28   :  { %1064 = vmatpush3.bf16.msra.mxu0 %v1228_v26  ;;  %v1273_v24 = vld [vmem:[%s1457_s3] sm:$0xff]   ;;  %v1275_v26 = vld [vmem:[%s1459_s5 + $0x30] sm:$0xff]  }
  0x29   :  { %1086 = vmatpush3.bf16.msra.mxu1 %v1229_v27  ;;  %1065 = vmatprep.subr.bf16.mxu0 %v1230_v28  ;;  %v1276_v27 = vld [vmem:[%s1459_s5 + $0x28] sm:$0xff]   ;;  %v1277_v28 = vld [vmem:[%s1459_s5 + $0x20] sm:$0xff]  }
  0x2a   :  { %1087 = vmatprep.subr.bf16.mxu1 %v1231_v29  ;;  %v1278_v29 = vld [vmem:[%s1459_s5 + $0x18] sm:$0xff]  }
  0x2c   :  { %1066 = vmatpush3.bf16.msra.mxu0 %v1232_v30  ;;  %v1279_v30 = vld [vmem:[%s1459_s5 + $0x10] sm:$0xff]  }
  0x2d   :  { %1088 = vmatpush3.bf16.msra.mxu1 %v1233_v31  ;;  %1095 = vmatprep.subr.bf16.mxu0 %v1234_v40  ;;  %v968_v40 = vld [vmem:[%s1456_s2] ss:$0 sm:$0xff] }
  0x2e   :  { %1117 = vmatprep.subr.bf16.mxu1 %v1235_v41 }
  0x2f   :  { %609 = vmatmul.mubr.bf16.vlgmr.msra.gmra.mxu0 %v178_v37 }
  0x30   :  { %649 = vmatmul.mubr.bf16.vlgmr.msra.gmra.mxu1 %v180_v39  ;;  %1096 = vmatpush3.bf16.msra.mxu0 %v1236_v42 }
  0x31   :  { %1118 = vmatpush3.bf16.msra.mxu1 %v1237_v43  ;;  %1097 = vmatprep.subr.bf16.mxu0 %v1238_v44 }
  0x32   :  { %1119 = vmatprep.subr.bf16.mxu1 %v1239_v45  ;;  %688 = vmatprep.mubr.bf16.mxu0 %v183_v10 }
  0x33   :  { %728 = vmatprep.mubr.bf16.mxu1 %v185_v11 }
  0x34   :  { %1098 = vmatpush3.bf16.msra.mxu0 %v1240_v46 }
  0x35   :  { %1120 = vmatpush3.bf16.msra.mxu1 %v1241_v47  ;;  %1099 = vmatprep.subr.bf16.mxu0 %v1242_v48 }
  0x36   :  { %1121 = vmatprep.subr.bf16.mxu1 %v1243_v49 }
  0x38   :  { %1100 = vmatpush3.bf16.msra.mxu0 %v1244_v50 }
  0x39   :  { %1122 = vmatpush3.bf16.msra.mxu1 %v1245_v51  ;;  %1101 = vmatprep.subr.bf16.mxu0 %v1246_v52 }
  0x3a   :  { %1123 = vmatprep.subr.bf16.mxu1 %v1247_v53 }
  0x3c   :  { %1102 = vmatpush3.bf16.msra.mxu0 %v1248_v54 }
  0x3d   :  { %1124 = vmatpush3.bf16.msra.mxu1 %v1249_v55  ;;  %1103 = vmatprep.subr.bf16.mxu0 %v1250_v56 }
  0x3e   :  { %1125 = vmatprep.subr.bf16.mxu1 %v1251_v57 }
  0x40   :  { %1104 = vmatpush3.bf16.msra.mxu0 %v1252_v58  ;;  %v1280_v58 = vld [vmem:[%s1459_s5 + $0x8] sm:$0xff]  }
  0x41   :  { %1126 = vmatpush3.bf16.msra.mxu1 %v1253_v59  ;;  %1105 = vmatprep.subr.bf16.mxu0 %v1254_v60  ;;  %v1281_v59 = vld [vmem:[%s1459_s5] sm:$0xff]  }
  0x42   :  { %1127 = vmatprep.subr.bf16.mxu1 %v1255_v61  ;;  %v1033_v60 = vld [vmem:[%s1458_s4] ss:$0 sm:$0xff] }
  0x44   :  { %1106 = vmatpush3.bf16.msra.mxu0 %v1256_v62 }
  0x45   :  { %1128 = vmatpush3.bf16.msra.mxu1 %v1257_v63  ;;  %1107 = vmatprep.subr.bf16.mxu0 %v1258_v0 }
  0x46   :  { %1129 = vmatprep.subr.bf16.mxu1 %v1259_v1 }
  0x48   :  { %1108 = vmatpush3.bf16.msra.mxu0 %v1260_v2 }
  0x49   :  { %1130 = vmatpush3.bf16.msra.mxu1 %v1261_v3  ;;  %1109 = vmatprep.subr.bf16.mxu0 %v1262_v4  ;;  %v1042_v4 = vld [vmem:[%s1460_s6] ss:$0 sm:$0xff] }
  0x4a   :  { %1131 = vmatprep.subr.bf16.mxu1 %v1263_v5 }
  0x4c   :  { %1110 = vmatpush3.bf16.msra.mxu0 %v1264_v6 }
  0x4d   :  { %1132 = vmatpush3.bf16.msra.mxu1 %v1265_v7  ;;  %1157 = vmatprep.subr.bf16.mxu0 %v1307_v17 }
  0x4e   :  { %1177 = vmatprep.subr.bf16.mxu1 %v1307_v17 }
  0x4f   :  { %689 = vmatmul.mubr.bf16.vlgmr.msra.gmra.mxu0 %v182_v14 }
  0x50   :  { %729 = vmatmul.mubr.bf16.vlgmr.msra.gmra.mxu1 %v184_v15  ;;  %1158 = vmatpush3.bf16.msra.mxu0 %v1266_v16 }
  0x51   :  { %1159 = vmatprep.subr.bf16.mxu0 %v1307_v17  ;;  %1173 = vmatprep.mubr.msk.bf16.mxu0 %vm1308_vm0, %v1307_v17 }
  0x52   :  { %1193 = vmatprep.mubr.msk.bf16.mxu1 %vm1308_vm0, %v1307_v17  ;;  %1178 = vmatpush3.bf16.msra.mxu1 %v1274_v25 }
  0x53   :  { %1179 = vmatprep.subr.bf16.mxu1 %v1307_v17 }
  0x54   :  { %1160 = vmatpush3.bf16.msra.mxu0 %v1267_v18 }
  0x55   :  { %1161 = vmatprep.subr.bf16.mxu0 %v1307_v17 }
  0x56   :  { %1180 = vmatpush3.bf16.msra.mxu1 %v1275_v26 }
  0x57   :  { %1181 = vmatprep.subr.bf16.mxu1 %v1307_v17 }
  0x58   :  { %1162 = vmatpush3.bf16.msra.mxu0 %v1268_v19 }
  0x59   :  { %1163 = vmatprep.subr.bf16.mxu0 %v1307_v17 }
  0x5a   :  { %1182 = vmatpush3.bf16.msra.mxu1 %v1276_v27 }
  0x5b   :  { %1183 = vmatprep.subr.bf16.mxu1 %v1307_v17 }
  0x5c   :  { %1164 = vmatpush3.bf16.msra.mxu0 %v1269_v20 }
  0x5d   :  { %1165 = vmatprep.subr.bf16.mxu0 %v1307_v17 }
  0x5e   :  { %1184 = vmatpush3.bf16.msra.mxu1 %v1277_v28 }
  0x5f   :  { %1185 = vmatprep.subr.bf16.mxu1 %v1307_v17 }
  0x60   :  { %1166 = vmatpush3.bf16.msra.mxu0 %v1270_v21 }
  0x61   :  { %1167 = vmatprep.subr.bf16.mxu0 %v1307_v17 }
  0x62   :  { %1186 = vmatpush3.bf16.msra.mxu1 %v1278_v29 }
  0x63   :  { %1187 = vmatprep.subr.bf16.mxu1 %v1307_v17 }
  0x64   :  { %1168 = vmatpush3.bf16.msra.mxu0 %v1271_v22 }
  0x65   :  { %1169 = vmatprep.subr.bf16.mxu0 %v1307_v17 }
  0x66   :  { %1188 = vmatpush3.bf16.msra.mxu1 %v1279_v30 }
  0x67   :  { %1189 = vmatprep.subr.bf16.mxu1 %v1307_v17 }
  0x68   :  { %1170 = vmatpush3.bf16.msra.mxu0 %v1272_v23 }
  0x69   :  { %1171 = vmatprep.subr.bf16.mxu0 %v1307_v17 }
  0x6a   :  { %1190 = vmatpush3.bf16.msra.mxu1 %v1280_v58 }
  0x6b   :  { %1191 = vmatprep.subr.bf16.mxu1 %v1307_v17 }
  0x6c   :  { %1172 = vmatpush3.bf16.msra.mxu0 %v1273_v24 }
  0x6e   :  { %1192 = vmatpush3.bf16.msra.mxu1 %v1281_v59 }
  0xef   :  { %v1067_v31 = vpop.f32.mrf.mxu0 }
  0xf0   :  { %v1089_v32 = vpop.f32.mrf.mxu1 }
  0xf1   :  { %v1068_v33 = vpop.f32.mrf.mxu0 }
  0xf2   :  { %v1090_v34 = vpop.f32.mrf.mxu1  ;;  %v1069_v39 = vadd.f32 %v1068_v33, %v1067_v31 }
  0xf3   :  { %v1070_v35 = vpop.f32.mrf.mxu0  ;;  %v1091_v42 = vadd.f32 %v1090_v34, %v1089_v32 }
  0xf4   :  { %v1092_v36 = vpop.f32.mrf.mxu1  ;;  %v611_v41 = vadd.f32 %v1069_v39, %v968_v40 }
  0xf5   :  { %v1071_v37 = vpop.f32.mrf.mxu0 }
  0xf6   :  { %v1093_v38 = vpop.f32.mrf.mxu1  ;;  %v651_v46 = vadd.f32 %v1091_v42, %v611_v41 }
 0x10f   :  { %v1111_v43 = vpop.f32.mrf.mxu0 }
 0x110   :  { %v1133_v44 = vpop.f32.mrf.mxu1 }
 0x111   :  { %v1112_v45 = vpop.f32.mrf.mxu0 }
 0x112   :  { %v1113_v47 = vadd.f32 %v1112_v45, %v1111_v43  ;;  %v1134_v48 = vpop.f32.mrf.mxu1 }
 0x113   :  { %v1114_v49 = vpop.f32.mrf.mxu0  ;;  %v1135_v51 = vadd.f32 %v1134_v48, %v1133_v44 }
 0x114   :  { %v691_v50 = vadd.f32 %v1113_v47, %v651_v46  ;;  %v1136_v52 = vpop.f32.mrf.mxu1 }
 0x115   :  { %v1115_v53 = vpop.f32.mrf.mxu0 }
 0x116   :  { %v731_v54 = vadd.f32 %v1135_v51, %v691_v50  ;;  %v1137_v55 = vpop.f32.mrf.mxu1 }
 0x118   :  { %v736_v56 = vmax.f32 %v731_v54, 0.0 }
 0x11a   :  { %v754_v57 = vpack.c.bf16 %v736_v56, %v736_v56 }
 0x11c   :  { %1174 = vmatmul.mubr.bf16.vlgmr.msra.gmra.mxu0 %v754_v57 }
 0x1dc   :  { %v843_v61 = vpop.f32.mrf.mxu0 }
 0x1dd   :  { %v844_v62 = vadd.f32 %v1033_v60, %v843_v61 }
 0x1de   :  { %v1175_v63 = vpop.f32.mrf.mxu0 }
 0x1df   :  { %v849_v0 = vmax.f32 %v844_v62, 0.0 }
 0x1e0   :  { %v846_v1 = vpop.f32.mrf.mxu0 }
 0x1e1   :  { %v867_v2 = vpack.c.bf16 %v849_v0, %v849_v0 }
 0x1e2   :  { %v1176_v3 = vpop.f32.mrf.mxu0 }
 0x1e3   :  { %1194 = vmatmul.mubr.bf16.vlgmr.msra.gmra.mxu1 %v867_v2 }
 0x2a3   :  { %v956_v5 = vpop.f32.mrf.mxu1 }
 0x2a4   :  { %v957_v6 = vadd.f32 %v1042_v4, %v956_v5 }
 0x2a5   :  { %v1195_v7 = vpop.f32.mrf.mxu1 }
 0x2a6   :  { %962 = vst [vmem:[%s1461_s7] sm:$0xff] %v957_v6 }
 0x2a7   :  { %v959_v8 = vpop.f32.mrf.mxu1 }
 0x2a9   :  { %v1196_v9 = vpop.f32.mrf.mxu1 }
 0x2aa   :  { %967 = vsyncpa [#allocation3], 1 }

</bundles_post_ra>
